<compile_context>
chip_gen: v6e
topology: v6e:2x2x1
jax: 0.10.0
libtpu: 0.0.40
codegen_flags: <defaults>
</compile_context>

<pallas_src>
import jax
import jax.numpy as jnp
from jax.experimental import pallas as pl
from jax.experimental.pallas import tpu as pltpu


def conv_h_kernel(x_ref, w_ref, shift_ref, o_ref):
    # x_ref:     (CF, L)        lane-dense input slab: batch segments of halo-padded time on
    #                           lanes, C_in*F (freq folded into channels) on sublanes (bf16/f32)
    # w_ref:     (C_out, K*CF)  conv weights with 1/F freq-pool AND BN scale folded in, the K
    #                           taps stacked along the contraction axis
    # shift_ref: (C_out, 1)     folded conv-bias + BN shift (f32)
    # o_ref:     (C_out, L)     lane-dense output slab (f32)
    x = x_ref[...]                                  # (CF, L)
    cf, L = x.shape
    num_taps = w_ref.shape[1] // cf                 # K

    # Build the K time-shifted copies with lane rolls (XLU). Cross-segment wraps land only in
    # positions that are sliced away by the wrapper (t >= T_out inside each batch segment).
    taps = [x]
    for k in range(1, num_taps):
        taps.append(pltpu.roll(x, L - k, 1))        # == shift left by k along lanes
    xs = jnp.concatenate(taps, axis=0)              # (K*CF, L)

    # Single deep matmul on the MXU: freq-average + conv + BN scale in one contraction,
    # f32 accumulate.
    acc = jnp.dot(w_ref[...], xs, preferred_element_type=jnp.float32)   # (C_out, L)

    # f32 epilogue: (conv bias + BN shift) + ReLU
    o_ref[...] = jnp.maximum(acc + shift_ref[...], 0.0).astype(o_ref.dtype)


def conv_h_forward(x, w, b, gamma, beta, running_mean, running_var,
                   eps=1e-5, compute_dtype=jnp.bfloat16):
    N, C_in, F, T = x.shape
    C_out, _, K = w.shape
    pad = K // 2
    T_out = T + 2 * pad - K + 1
    CF = C_in * F
    S = T + 2 * pad                                 # per-batch halo-padded time segment
    L = ((N * S + 127) // 128) * 128                # lane-dense slab width (multiple of 128)

    # Fold inference BatchNorm: scale goes into the weights, bias+shift into one vector.
    inv_std = 1.0 / jnp.sqrt(running_var + eps)
    scale = gamma * inv_std                                               # (C_out,)
    shift = (beta + (b - running_mean) * scale).reshape(C_out, 1).astype(jnp.float32)

    # glue: fold batch+time into one lane axis; halo-pad each batch segment for the conv.
    # (x is tiny here; for large inputs this pad/transpose glue should move in-kernel.)
    x_cf = jnp.transpose(x.reshape(N, CF, T), (1, 0, 2))            # (CF, N, T)
    x_seg = jnp.pad(x_cf, ((0, 0), (0, 0), (pad, S - T - pad)))     # (CF, N, S)
    x_slab = jnp.pad(x_seg.reshape(CF, N * S), ((0, 0), (0, L - N * S)))
    x_slab = x_slab.astype(compute_dtype)                           # MXU operand

    # glue: weights (C_out, C_in, K) -> (C_out, K*CF); 1/F implements AvgPool2d((F,1)),
    # `scale` implements the BN multiplier.
    w_f = jnp.broadcast_to(w[:, :, None, :], (C_out, C_in, F, K)) \
          * (scale.reshape(C_out, 1, 1, 1) / F)
    w_kcf = jnp.transpose(w_f, (0, 3, 1, 2)).reshape(C_out, K * CF).astype(compute_dtype)

    out_slab = pl.pallas_call(
        conv_h_kernel,
        out_shape=jax.ShapeDtypeStruct((C_out, L), jnp.float32),
        grid_spec=pltpu.PrefetchScalarGridSpec(
            num_scalar_prefetch=0,
            grid=(1,),                               # whole (tiny) problem in one grid step
            in_specs=[
                pl.BlockSpec((CF, L), lambda i: (0, 0)),
                pl.BlockSpec((C_out, K * CF), lambda i: (0, 0)),
                pl.BlockSpec((C_out, 1), lambda i: (0, 0)),
            ],
            out_specs=pl.BlockSpec((C_out, L), lambda i: (0, 0)),
        ),
        compiler_params=pltpu.CompilerParams(
            dimension_semantics=("parallel",),
        ),
    )(x_slab, w_kcf, shift)

    # glue: un-fold the lane-dense slab back to PyTorch's (N, C_out, T_out)
    out = out_slab[:, :N * S].reshape(C_out, N, S)[:, :, :T_out]
    return jnp.transpose(out, (1, 0, 2)).astype(x.dtype)


def conv_h_reference(x, w, b, gamma, beta, running_mean, running_var, eps=1e-5):
    pooled = jnp.mean(x, axis=2)                    # (N, C_in, T)
    pad = w.shape[2] // 2
    conv = jax.lax.conv_general_dilated(
        pooled, w, window_strides=(1,), padding=[(pad, pad)],
        dimension_numbers=("NCH", "OIH", "NCH"))
    conv = conv + b.reshape(1, -1, 1)
    y = (conv - running_mean.reshape(1, -1, 1)) / jnp.sqrt(running_var.reshape(1, -1, 1) + eps)
    y = y * gamma.reshape(1, -1, 1) + beta.reshape(1, -1, 1)
    return jnp.maximum(y, 0.0)


if __name__ == "__main__":
    key = jax.random.PRNGKey(0)
    k1, k2, k3, k4, k5, k6, k7 = jax.random.split(key, 7)

    N, C_in, F, T = 2, 4, 16, 16      # batch, input_channels, freq, time
    C_out, K = 8, 3                   # output_channels, filter_length (pad = K//2)

    x = jax.random.normal(k1, (N, C_in, F, T), jnp.float32)

    # deterministic parameter init (Conv1d default-style uniform, BN stats synthetic)
    bound = 1.0 / ((C_in * K) ** 0.5)
    w = jax.random.uniform(k2, (C_out, C_in, K), jnp.float32, -bound, bound)
    b = jax.random.uniform(k3, (C_out,), jnp.float32, -bound, bound)
    gamma = jax.random.uniform(k4, (C_out,), jnp.float32, 0.5, 1.5)
    beta = jax.random.normal(k5, (C_out,), jnp.float32) * 0.1
    running_mean = jax.random.normal(k6, (C_out,), jnp.float32) * 0.1
    running_var = jax.random.uniform(k7, (C_out,), jnp.float32, 0.5, 1.5)

    ref = conv_h_reference(x, w, b, gamma, beta, running_mean, running_var)

    # f32 MXU operands: tight structural/numerical check of the kernel
    out_f32 = jax.block_until_ready(
        conv_h_forward(x, w, b, gamma, beta, running_mean, running_var,
                       compute_dtype=jnp.float32))
    assert out_f32.shape == (N, C_out, T), out_f32.shape
    assert jnp.allclose(out_f32, ref, atol=1e-3, rtol=1e-3), \
        float(jnp.max(jnp.abs(out_f32 - ref)))

    # bf16 MXU operands (v6e/v7x fast path), f32 accumulate + epilogue: bf16-level tolerance
    out_bf16 = jax.block_until_ready(
        conv_h_forward(x, w, b, gamma, beta, running_mean, running_var,
                       compute_dtype=jnp.bfloat16))
    assert out_bf16.shape == (N, C_out, T), out_bf16.shape
    assert jnp.allclose(out_bf16, ref, atol=3e-2, rtol=3e-2), \
        float(jnp.max(jnp.abs(out_bf16 - ref)))

    print("KERNEL_OK")
</pallas_src>

<mosaic_0001>
module attributes {stable_mosaic.version = 11 : i64} {
  func.func @conv_h_kernel(%arg0: i32, %arg1: memref<64x128xf32, #tpu.memory_space<vmem>>, %arg2: memref<8x192xf32, #tpu.memory_space<vmem>>, %arg3: memref<8x1xf32, #tpu.memory_space<vmem>>, %arg4: memref<8x128xf32, #tpu.memory_space<vmem>>) attributes {dimension_semantics = [#tpu.dimension_semantics<parallel>], iteration_bounds = array<i64: 1>, scalar_prefetch = 0 : i64, scratch_operands = 0 : i64, tpu.core_type = #tpu.core_type<tc>, window_params = [{pipeline_mode = #tpu.pipeline_mode<synchronous>, transform_indices = @transform_0, window_bounds = array<i64: 64, 128>}, {pipeline_mode = #tpu.pipeline_mode<synchronous>, transform_indices = @transform_1, window_bounds = array<i64: 8, 192>}, {pipeline_mode = #tpu.pipeline_mode<synchronous>, transform_indices = @transform_2, window_bounds = array<i64: 8, 1>}, {pipeline_mode = #tpu.pipeline_mode<synchronous>, transform_indices = @transform_3, window_bounds = array<i64: 8, 128>}]} {
    %c0 = arith.constant 0 : index
    %c0_0 = arith.constant 0 : index
    %0 = vector.load %arg1[%c0, %c0_0] : memref<64x128xf32, #tpu.memory_space<vmem>>, vector<64x128xf32>
    %c127_i32 = arith.constant 127 : i32
    %1 = tpu.dynamic_rotate %0 by %c127_i32 dim 1 : vector<64x128xf32>, i32 -> vector<64x128xf32>
    %c126_i32 = arith.constant 126 : i32
    %2 = tpu.dynamic_rotate %0 by %c126_i32 dim 1 : vector<64x128xf32>, i32 -> vector<64x128xf32>
    %3 = tpu.concatenate %0, %1, %2 in 0 : vector<64x128xf32>, vector<64x128xf32>, vector<64x128xf32> -> vector<192x128xf32>
    %c0_1 = arith.constant 0 : index
    %c0_2 = arith.constant 0 : index
    %4 = vector.load %arg2[%c0_1, %c0_2] : memref<8x192xf32, #tpu.memory_space<vmem>>, vector<8x192xf32>
    %cst = arith.constant dense<0.000000e+00> : vector<8x128xf32>
    %5 = tpu.matmul %4, %3, %cst {dimension_numbers = #tpu.dot_dimension_numbers<[1], [0], [0], [1], [0, 0, 1, 1], [], []>} : vector<8x192xf32>, vector<192x128xf32>, vector<8x128xf32> -> vector<8x128xf32>
    %c0_3 = arith.constant 0 : index
    %c0_4 = arith.constant 0 : index
    %6 = vector.load %arg3[%c0_3, %c0_4] : memref<8x1xf32, #tpu.memory_space<vmem>>, vector<8x1xf32>
    %7 = vector.broadcast %6 : vector<8x1xf32> to vector<8x128xf32>
    %8 = arith.addf %5, %7 : vector<8x128xf32>
    %cst_5 = arith.constant 0.000000e+00 : f32
    %9 = vector.broadcast %cst_5 : f32 to vector<8x128xf32>
    %10 = arith.maximumf %8, %9 : vector<8x128xf32>
    %c0_6 = arith.constant 0 : index
    %c0_7 = arith.constant 0 : index
    %11 = vector.load %arg4[%c0_6, %c0_7] : memref<8x128xf32, #tpu.memory_space<vmem>>, vector<8x128xf32>
    tpu.vector_store %arg4[%c0_6, %c0_7], %10 {strides = array<i32>} : memref<8x128xf32, #tpu.memory_space<vmem>>, vector<8x128xf32>,
    return
  }
  func.func @transform_0(%arg0: i32) -> (i32, i32) {
    %c0_i32 = arith.constant 0 : i32
    %c0_i32_0 = arith.constant 0 : i32
    %c0_i32_1 = arith.constant 0 : i32
    return %c0_i32, %c0_i32_0 : i32, i32
  }
  func.func @transform_1(%arg0: i32) -> (i32, i32) {
    %c0_i32 = arith.constant 0 : i32
    %c0_i32_0 = arith.constant 0 : i32
    %c0_i32_1 = arith.constant 0 : i32
    return %c0_i32, %c0_i32_0 : i32, i32
  }
  func.func @transform_2(%arg0: i32) -> (i32, i32) {
    %c0_i32 = arith.constant 0 : i32
    %c0_i32_0 = arith.constant 0 : i32
    %c0_i32_1 = arith.constant 0 : i32
    return %c0_i32, %c0_i32_0 : i32, i32
  }
  func.func @transform_3(%arg0: i32) -> (i32, i32) {
    %c0_i32 = arith.constant 0 : i32
    %c0_i32_0 = arith.constant 0 : i32
    %c0_i32_1 = arith.constant 0 : i32
    return %c0_i32, %c0_i32_0 : i32, i32
  }
}

</mosaic_0001>

<bundles_post_ra>
// kernel: tpu_custom_call.1
= control target key start
LH: loop header
LB: loop body
LE: loop exit
PB: predicated region body
PF: predicated region fallthrough
CT: control target
= control target key end

     0   :  { %8 = vsyncpa [#allocation3], 0  ;;  %s323_s0 = inlined_call_operand.hbm [shape: f32[64,128], index: 0, kind: input, shape index: {}]   ;;  %s324_s1 = inlined_call_operand.hbm [shape: f32[8,192], index: 1, kind: input, shape index: {}]   ;;  %s325_s2 = inlined_call_operand.vmem [shape: f32[8,1], index: 2, kind: input, shape index: {}]   ;;  %s326_s3 = inlined_call_operand.hbm [shape: f32[8,128], index: 3, kind: output, shape index: {}]  }
   0x1   :  { %9 = vsyncpa [#allocation6], 0 }
   0x2   :  { %10 = vsyncpa [#allocation4], 0  ;;  %s258_s12 = smov [#allocation2]  }
   0x3   :  { %s16_s13 = sshll.u32 %s258_s12, 4  ;;  %s17_s13 = int_to_ptr.vmem [resolvable:$true] %s16_s13 }
   0x4   :  { %s200_s14 = scalar_lea.vmem %s17_s13, 1024  ;;  %p205_p1 = scmp.lt.s32.totalorder %s17_s13, %s17_s13 }
   0x5   :  { %p201_p0 = scmp.ne.s32.totalorder %s17_s13, %s200_s14  ;;  %p206_p2 = scmp.lt.s32.totalorder %s200_s14, %s200_s14 }
   0x7   :  { %p207_p3 = por %p206_p2, %p205_p1 }
   0x9   :  { %p208_p4 = pnand %p207_p3, %p201_p0 }
   0xb   :  { %211 = shalt.err (!%p208_p4)
}
   0xc   :  { %s259_s15 = smov 128   ;;  %s260_s16 = smov 8  }
   0xd   :  { %22 = dma.hbm_to_vmem [thread:$0]  %s323_s0, 1024, %s17_s13, [#allocation3], %s259_s15, %s259_s15, %s260_s16  }
   0xe   :  { %s261_s19 = smov [#allocation5]  }
   0xf   :  { %s29_s20 = sshll.u32 %s261_s19, 4  ;;  %s30_s20 = int_to_ptr.vmem [resolvable:$true] %s29_s20 }
  0x10   :  { %s220_s21 = scalar_lea.vmem %s30_s20, 256  ;;  %p225_p6 = scmp.lt.s32.totalorder %s30_s20, %s30_s20 }
  0x11   :  { %p221_p5 = scmp.ne.s32.totalorder %s30_s20, %s220_s21  ;;  %p226_p7 = scmp.lt.s32.totalorder %s220_s21, %s220_s21 }
  0x13   :  { %p227_p8 = por %p226_p7, %p225_p6 }
  0x15   :  { %p228_p9 = pnand %p227_p8, %p221_p5 }
  0x17   :  { %231 = shalt.err (!%p228_p9)
}
  0x18   :  { %32 = dma.hbm_to_vmem [thread:$0]  %s324_s1, 256, %s30_s20, [#allocation6]  }
  0x19   :  { %252 = dma.done.wait [#allocation3], 1024  }
  0x1a   :  { %253 = vsyncadd [#allocation3], 4294966272 }
  0x1b   :  { %254 = dma.done.wait [#allocation6], 256  }
  0x1c   :  { %255 = vsyncadd [#allocation6], 4294967040  ;;  %v262_v0 = vmov 0.0   ;;  %v48_v1 = vld [vmem:[#allocation2 + $0x38] sm:$0xff]  ;;  %v46_v2 = vld [vmem:[#allocation2 + $0x28] sm:$0xff]  ;;  %s263_s0 = smov 127  }
  0x1d   :  { %93 = vmatprep.subr.mxu0 %v262_v0  ;;  %63 = vrot.lane.b32.xlu0 %v48_v1, %s263_s0  ;;  %v47_v3 = vld [vmem:[#allocation2 + $0x30] sm:$0xff]  ;;  %v45_v4 = vld [vmem:[#allocation2 + $0x20] sm:$0xff]  ;;  %v44_v5 = vld [vmem:[#allocation2 + $0x18] sm:$0xff]  ;;  %s264_s1 = smov 126   ;;  %vm89_vm0 = vcmask 523264   ;;  %v265_v11 = vmov 0  }
  0x1e   :  { %59 = vrot.lane.b32.xlu1 %v46_v2, %s263_s0  ;;  %v43_v6 = vld [vmem:[#allocation2 + $0x10] sm:$0xff]  ;;  %v42_v7 = vld [vmem:[#allocation2 + $0x8] sm:$0xff]  ;;  %v41_v8 = vld [vmem:[#allocation2] sm:$0xff]  ;;  %191 = vset.pattern.permute.xlu0 %v265_v11 }
  0x1f   :  { %v82_v9 = vld [vmem:[#allocation5 + $0x8] sm:$0xff]  ;;  %v83_v10 = vld [vmem:[%s325_s2] sm:$0xff]  ;;  %s266_s2 = smov [#allocation7]  }
  0x20   :  { %181 = vmatprep.mubr.msk.f32.mxu0 %vm89_vm0, %v82_v9  ;;  %v81_v28 = vld [vmem:[#allocation5] sm:$0xff]  ;;  %s171_s26 = sshll.u32 %s266_s2, 4  ;;  %s172_s26 = int_to_ptr.vmem [resolvable:$true] %s171_s26 }
  0x21   :  { %61 = vrot.lane.b32.xlu0 %v47_v3, %s263_s0  ;;  %s232_s27 = scalar_lea.vmem %s172_s26, 128  ;;  %p237_p11 = scmp.lt.s32.totalorder %s172_s26, %s172_s26 }
  0x22   :  { %57 = vrot.lane.b32.xlu1 %v45_v4, %s263_s0  ;;  %p233_p10 = scmp.ne.s32.totalorder %s172_s26, %s232_s27  ;;  %p238_p12 = scmp.lt.s32.totalorder %s232_s27, %s232_s27 }
  0x24   :  { %p239_p13 = por %p238_p12, %p237_p11 }
  0x25   :  { %55 = vrot.lane.b32.xlu0 %v44_v5, %s263_s0 }
  0x26   :  { %53 = vrot.lane.b32.xlu1 %v43_v6, %s263_s0  ;;  %p240_p0 = pnand %p239_p13, %p233_p10 }
  0x29   :  { %51 = vrot.lane.b32.xlu0 %v42_v7, %s263_s0 }
  0x2a   :  { %49 = vrot.lane.b32.xlu1 %v41_v8, %s263_s0 }
  0x2d   :  { %79 = vrot.lane.b32.xlu0 %v48_v1, %s264_s1 }
  0x2e   :  { %77 = vrot.lane.b32.xlu1 %v47_v3, %s264_s1 }
  0x31   :  { %75 = vrot.lane.b32.xlu0 %v46_v2, %s264_s1 }
  0x32   :  { %73 = vrot.lane.b32.xlu1 %v45_v4, %s264_s1 }
  0x35   :  { %71 = vrot.lane.b32.xlu0 %v44_v5, %s264_s1 }
  0x36   :  { %69 = vrot.lane.b32.xlu1 %v43_v6, %s264_s1 }
  0x39   :  { %67 = vrot.lane.b32.xlu0 %v42_v7, %s264_s1 }
  0x3a   :  { %65 = vrot.lane.b32.xlu1 %v41_v8, %s264_s1 }
  0x3d   :  { %86 = vperm.xlu0 %191, %v83_v10  }
  0x8f   :  { %v64_v12 = vpop.permute.xlu0 %63 }
  0x90   :  { %v60_v13 = vpop.permute.xlu1 %59  ;;  %94 = vmatpush1.msra.mxu0 %v64_v12 }
  0x91   :  { %95 = vmatprep.subr.mxu0 %v262_v0 }
  0x93   :  { %v62_v14 = vpop.permute.xlu0 %61 }
  0x94   :  { %v58_v15 = vpop.permute.xlu1 %57  ;;  %96 = vmatpush1.msra.mxu0 %v62_v14 }
  0x95   :  { %97 = vmatprep.subr.mxu0 %v262_v0 }
  0x96   :  { %98 = vmatpush1.msra.mxu0 %v60_v13 }
  0x97   :  { %99 = vmatprep.subr.mxu0 %v262_v0  ;;  %v56_v16 = vpop.permute.xlu0 %55 }
  0x98   :  { %v54_v17 = vpop.permute.xlu1 %53  ;;  %100 = vmatpush1.msra.mxu0 %v58_v15 }
  0x99   :  { %101 = vmatprep.subr.mxu0 %v262_v0 }
  0x9a   :  { %102 = vmatpush1.msra.mxu0 %v56_v16 }
  0x9b   :  { %103 = vmatprep.subr.mxu0 %v262_v0  ;;  %v52_v18 = vpop.permute.xlu0 %51 }
  0x9c   :  { %104 = vmatpush1.msra.mxu0 %v54_v17  ;;  %v50_v19 = vpop.permute.xlu1 %49 }
  0x9d   :  { %105 = vmatprep.subr.mxu0 %v262_v0 }
  0x9e   :  { %106 = vmatpush1.msra.mxu0 %v52_v18 }
  0x9f   :  { %107 = vmatprep.subr.mxu0 %v262_v0  ;;  %v80_v20 = vpop.permute.xlu0 %79 }
  0xa0   :  { %108 = vmatpush1.msra.mxu0 %v50_v19  ;;  %v78_v21 = vpop.permute.xlu1 %77 }
  0xa1   :  { %109 = vmatprep.subr.mxu0 %v262_v0 }
  0xa2   :  { %110 = vmatpush1.msra.mxu0 %v48_v1 }
  0xa3   :  { %111 = vmatprep.subr.mxu0 %v262_v0  ;;  %v76_v22 = vpop.permute.xlu0 %75 }
  0xa4   :  { %112 = vmatpush1.msra.mxu0 %v47_v3  ;;  %v74_v23 = vpop.permute.xlu1 %73 }
  0xa5   :  { %113 = vmatprep.subr.mxu0 %v262_v0 }
  0xa6   :  { %114 = vmatpush1.msra.mxu0 %v46_v2 }
  0xa7   :  { %115 = vmatprep.subr.mxu0 %v262_v0  ;;  %v72_v24 = vpop.permute.xlu0 %71 }
  0xa8   :  { %116 = vmatpush1.msra.mxu0 %v45_v4  ;;  %v70_v25 = vpop.permute.xlu1 %69 }
  0xa9   :  { %117 = vmatprep.subr.mxu0 %v262_v0 }
  0xaa   :  { %118 = vmatpush1.msra.mxu0 %v44_v5 }
  0xab   :  { %119 = vmatprep.subr.mxu0 %v262_v0  ;;  %v68_v26 = vpop.permute.xlu0 %67 }
  0xac   :  { %120 = vmatpush1.msra.mxu0 %v43_v6  ;;  %v66_v27 = vpop.permute.xlu1 %65 }
  0xad   :  { %121 = vmatprep.subr.mxu0 %v262_v0 }
  0xae   :  { %122 = vmatpush1.msra.mxu0 %v42_v7 }
  0xaf   :  { %123 = vmatprep.subr.mxu0 %v262_v0 }
  0xb0   :  { %124 = vmatpush1.msra.mxu0 %v41_v8 }
  0xb1   :  { %141 = vmatprep.subr.mxu0 %v262_v0 }
  0xb2   :  { %142 = vmatpush2.msra.mxu0 %v80_v20 }
  0xb3   :  { %143 = vmatprep.subr.mxu0 %v262_v0 }
  0xb4   :  { %144 = vmatpush2.msra.mxu0 %v78_v21 }
  0xb5   :  { %145 = vmatprep.subr.mxu0 %v262_v0 }
  0xb6   :  { %146 = vmatpush2.msra.mxu0 %v76_v22 }
  0xb7   :  { %147 = vmatprep.subr.mxu0 %v262_v0 }
  0xb8   :  { %148 = vmatpush2.msra.mxu0 %v74_v23  ;;  %v87_v29 = vpop.permute.xlu0 %86 }
  0xb9   :  { %149 = vmatprep.subr.mxu0 %v262_v0 }
  0xba   :  { %150 = vmatpush2.msra.mxu0 %v72_v24 }
  0xbb   :  { %151 = vmatprep.subr.mxu0 %v262_v0 }
  0xbc   :  { %152 = vmatpush2.msra.mxu0 %v70_v25 }
  0xbd   :  { %153 = vmatprep.subr.mxu0 %v262_v0 }
  0xbe   :  { %154 = vmatpush2.msra.mxu0 %v68_v26 }
  0xbf   :  { %155 = vmatprep.subr.mxu0 %v262_v0 }
  0xc0   :  { %156 = vmatpush2.msra.mxu0 %v66_v27 }
  0xc1   :  { %158 = vmatmul.mubr.f32.vlgmr.msra.gmra.mxu0 %v81_v28 }
 0x181   :  { %v159_v30 = vpop.f32.mrf.mxu0 }
 0x182   :  { %v160_v31 = vadd.f32 %v159_v30, %v87_v29 }
 0x183   :  { %v161_v32 = vpop.f32.mrf.mxu0 }
 0x184   :  { %v163_v33 = vmax.f32 %v160_v31, 0.0 }
 0x186   :  { %164 = vst [vmem:[#allocation7] sm:$0xff] %v163_v33 }
 0x187   :  { %243 = shalt.err (!%p240_p0)
}
 0x188   :  { %174 = dma.vmem_to_hbm [thread:$0]  %s172_s26, 128, %s326_s3, [#allocation4]  }
 0x189   :  { %256 = dma.done.wait [#allocation4], 128  }
 0x18a   :  { %257 = vsyncadd [#allocation4], 4294967168 }
 0x18b   :  { %178 = vsyncpa [#allocation3], 1 }
 0x18c   :  { %179 = vsyncpa [#allocation6], 1 }
 0x18d   :  { %180 = vsyncpa [#allocation4], 1 }

</bundles_post_ra>
